<compile_context>
chip_gen: v7x
topology: tpu7x:2x2x1
jax: 0.10.0
libtpu: 0.0.40
codegen_flags: <defaults>
</compile_context>

<pallas_src>
import functools

import jax
import jax.numpy as jnp
import numpy as np
from jax.experimental import pallas as pl
from jax.experimental.pallas import tpu as pltpu

_LANES = 128
# Per-input, per-block VMEM footprint target.  2 inputs x 2 pipeline buffers
# x 4 MiB = 16 MiB of streaming buffers plus f32 temporaries stays well under
# the 48 MiB scoped VMEM limit on every generation (incl. v7x's 64 MiB
# physical VMEM) while keeping per-grid-step overhead <10% of per-step DMA.
_TARGET_BLOCK_BYTES = 4 * 1024 * 1024
_VMEM_LIMIT_BYTES = 48 * 1024 * 1024


def _dice_kernel(x_ref, t_ref, dice_ref, inter_acc, den_acc, *,
                 smooth, valid_rows_last, ragged_rows):
    k = pl.program_id(1)
    nk = pl.num_programs(1)

    @pl.when(k == 0)
    def _():
        inter_acc[...] = jnp.zeros_like(inter_acc)
        den_acc[...] = jnp.zeros_like(den_acc)

    def accumulate(x, t):
        # Row-axis (sublane) reductions: mostly VALU vreg adds + one small
        # intra-vreg reduce; lanes stay un-reduced until the epilogue.
        inter_acc[...] += jnp.sum(x * t, axis=1)       # (b_tile, 128)
        den_acc[...] += jnp.sum(x + t, axis=1)         # (b_tile, 128)

    if ragged_rows:
        # Only the last K step can touch rows past the real data; gate the
        # masking there so every other block pays zero extra VALU work.
        @pl.when(k != nk - 1)
        def _():
            accumulate(x_ref[...].astype(jnp.float32),
                       t_ref[...].astype(jnp.float32))

        @pl.when(k == nk - 1)
        def _():
            x = x_ref[...].astype(jnp.float32)
            t = t_ref[...].astype(jnp.float32)
            row_id = jax.lax.broadcasted_iota(jnp.int32, x.shape, 1)
            keep = row_id < valid_rows_last
            # Select, not multiply-by-zero: OOB rows are stale VMEM and may
            # hold NaN/Inf bit patterns (0 * NaN would poison the accums).
            accumulate(jnp.where(keep, x, 0.0), jnp.where(keep, t, 0.0))
    else:
        accumulate(x_ref[...].astype(jnp.float32),
                   t_ref[...].astype(jnp.float32))

    @pl.when(k == nk - 1)
    def _():
        # Single cross-lane (XLU) reduce per sample, done exactly once.
        inter = jnp.sum(inter_acc[...], axis=1, keepdims=True)   # (b_tile, 1)
        den = jnp.sum(den_acc[...], axis=1, keepdims=True)
        dice = 2.0 * (inter + smooth) / (den + smooth)
        # Lane-dense output slab -> unmasked vst.
        dice_ref[...] = jnp.broadcast_to(dice, dice_ref.shape)


def dice_loss(inputs, targets, smooth=1.0):
    """Pallas implementation of DiceLoss.forward (returns a scalar f32)."""
    n = inputs.shape[0]
    d = 1
    for s in inputs.shape[1:]:
        d *= s
    r = pl.cdiv(d, _LANES)

    x = inputs.reshape(n, -1)     # native dtype; cast happens inside kernel
    t = targets.reshape(n, -1)
    if r * _LANES != d:
        # TODO(synk): mask tail lanes in-kernel for ragged D instead of
        # materializing padded HBM copies (rare for image workloads).
        pad = r * _LANES - d
        x = jnp.pad(x, ((0, 0), (0, pad)))
        t = jnp.pad(t, ((0, 0), (0, pad)))
    # Row-major (free) reshape to the lane-dense per-sample layout.
    x = x.reshape(n, r, _LANES)
    t = t.reshape(n, r, _LANES)

    # Native sublane multiple of the most packed input dtype (f32->8,
    # bf16->16, int8->32) keeps row chunks layout-aligned.
    min_item = min(x.dtype.itemsize, t.dtype.itemsize)
    max_item = max(x.dtype.itemsize, t.dtype.itemsize)
    sub_mult = max(8, 8 * (4 // max(1, min_item)))
    rows_budget = max(sub_mult,
                      (_TARGET_BLOCK_BYTES // (_LANES * max_item))
                      // sub_mult * sub_mult)

    if r <= rows_budget:
        # Small samples: batch several per grid step (amortizes per-step
        # overhead, keeps DMAs large/contiguous); single K step, no row rag.
        rows_chunk = r
        b_tile = min(n, max(1, rows_budget // r))
        if b_tile < n:
            b_tile = max(8, b_tile // 8 * 8)   # (8,128) rule on the out block
        num_k = 1
    else:
        rows_chunk = rows_budget               # multiple of the sublane pack
        b_tile = 1
        num_k = pl.cdiv(r, rows_chunk)
    num_b = pl.cdiv(n, b_tile)
    valid_rows_last = r - (num_k - 1) * rows_chunk
    ragged_rows = valid_rows_last != rows_chunk

    kernel = functools.partial(
        _dice_kernel, smooth=float(smooth),
        valid_rows_last=valid_rows_last, ragged_rows=ragged_rows)

    # TODO(synk): v7x tiny-batch (n < 2) megacore path: split K across the two
    # TensorCores with per-core partials summed in the JAX epilogue.
    dice = pl.pallas_call(
        kernel,
        out_shape=jax.ShapeDtypeStruct((num_b * b_tile, _LANES), jnp.float32),
        grid_spec=pltpu.PrefetchScalarGridSpec(
            num_scalar_prefetch=0,
            grid=(num_b, num_k),
            in_specs=[
                pl.BlockSpec((b_tile, rows_chunk, _LANES),
                             lambda b, k: (b, k, 0)),
                pl.BlockSpec((b_tile, rows_chunk, _LANES),
                             lambda b, k: (b, k, 0)),
            ],
            out_specs=pl.BlockSpec((b_tile, _LANES), lambda b, k: (b, 0)),
            scratch_shapes=[
                pltpu.VMEM((b_tile, _LANES), jnp.float32),  # intersection
                pltpu.VMEM((b_tile, _LANES), jnp.float32),  # sum(x) + sum(t)
            ],
        ),
        compiler_params=pltpu.CompilerParams(
            dimension_semantics=("parallel", "arbitrary"),
            vmem_limit_bytes=_VMEM_LIMIT_BYTES,
        ),
    )(x, t)

    # Tiny epilogue: mean over the n valid samples (ragged-batch tail rows in
    # the padded output are simply discarded here).
    return 1.0 - jnp.sum(dice[:n, 0]) / n


def _dice_loss_ref(inputs, targets, smooth=1.0):
    n = inputs.shape[0]
    x = inputs.reshape(n, -1).astype(jnp.float32)
    t = targets.reshape(n, -1).astype(jnp.float32)
    inter = (x * t).sum(1)
    return 1.0 - (2.0 * (inter + smooth)
                  / (x.sum(1) + t.sum(1) + smooth)).sum() / n


if __name__ == "__main__":
    key = jax.random.PRNGKey(0)
    k1, k2 = jax.random.split(key)

    # Small NCHW-shaped example consistent with a segmentation use case.
    x = jax.random.uniform(k1, (2, 4, 16, 16), dtype=jnp.float32)             # predictions
    tgt = (jax.random.uniform(k2, (2, 4, 16, 16)) > 0.5).astype(jnp.float32)  # binary mask

    out = jax.block_until_ready(dice_loss(x, tgt, smooth=1.0))
    ref = _dice_loss_ref(x, tgt, smooth=1.0)

    np.testing.assert_allclose(np.asarray(out), np.asarray(ref),
                               rtol=1e-5, atol=1e-5)
    print("KERNEL_OK")
</pallas_src>

<mosaic_0001>
module attributes {stable_mosaic.version = 11 : i64} {
  func.func @_dice_kernel(%arg0: i32, %arg1: i32, %arg2: memref<2x8x128xf32, #tpu.memory_space<vmem>>, %arg3: memref<2x8x128xf32, #tpu.memory_space<vmem>>, %arg4: memref<2x128xf32, #tpu.memory_space<vmem>>, %arg5: memref<2x128xf32, #tpu.memory_space<vmem>>, %arg6: memref<2x128xf32, #tpu.memory_space<vmem>>) attributes {dimension_semantics = [#tpu.dimension_semantics<parallel>, #tpu.dimension_semantics<arbitrary>], iteration_bounds = array<i64: 1, 1>, scalar_prefetch = 0 : i64, scratch_operands = 2 : i64, tpu.core_type = #tpu.core_type<tc>, window_params = [{transform_indices = @transform_0, window_bounds = array<i64: 2, 8, 128>}, {transform_indices = @transform_1, window_bounds = array<i64: 2, 8, 128>}, {transform_indices = @transform_2, window_bounds = array<i64: 2, 128>}]} {
    %c0_i32 = arith.constant 0 : i32
    %0 = arith.cmpi eq, %arg1, %c0_i32 : i32
    %1 = arith.extui %0 : i1 to i32
    %c0_i32_0 = arith.constant 0 : i32
    %2 = arith.cmpi ne, %1, %c0_i32_0 : i32
    scf.if %2 {
      %cst_17 = arith.constant 0.000000e+00 : f32
      %18 = vector.broadcast %cst_17 : f32 to vector<2x128xf32>
      %c0_18 = arith.constant 0 : index
      %c0_19 = arith.constant 0 : index
      %19 = vector.load %arg5[%c0_18, %c0_19] : memref<2x128xf32, #tpu.memory_space<vmem>>, vector<2x128xf32>
      tpu.vector_store %arg5[%c0_18, %c0_19], %18 {strides = array<i32>} : memref<2x128xf32, #tpu.memory_space<vmem>>, vector<2x128xf32>,
      %cst_20 = arith.constant 0.000000e+00 : f32
      %20 = vector.broadcast %cst_20 : f32 to vector<2x128xf32>
      %c0_21 = arith.constant 0 : index
      %c0_22 = arith.constant 0 : index
      %21 = vector.load %arg6[%c0_21, %c0_22] : memref<2x128xf32, #tpu.memory_space<vmem>>, vector<2x128xf32>
      tpu.vector_store %arg6[%c0_21, %c0_22], %20 {strides = array<i32>} : memref<2x128xf32, #tpu.memory_space<vmem>>, vector<2x128xf32>,
    } else {
    }
    %c0 = arith.constant 0 : index
    %c0_1 = arith.constant 0 : index
    %c0_2 = arith.constant 0 : index
    %3 = vector.load %arg2[%c0, %c0_1, %c0_2] : memref<2x8x128xf32, #tpu.memory_space<vmem>>, vector<2x8x128xf32>
    %c0_3 = arith.constant 0 : index
    %c0_4 = arith.constant 0 : index
    %c0_5 = arith.constant 0 : index
    %4 = vector.load %arg3[%c0_3, %c0_4, %c0_5] : memref<2x8x128xf32, #tpu.memory_space<vmem>>, vector<2x8x128xf32>
    %c0_6 = arith.constant 0 : index
    %c0_7 = arith.constant 0 : index
    %5 = vector.load %arg5[%c0_6, %c0_7] : memref<2x128xf32, #tpu.memory_space<vmem>>, vector<2x128xf32>
    %6 = arith.mulf %3, %4 : vector<2x8x128xf32>
    %cst = arith.constant dense<0.000000e+00> : vector<2x128xf32>
    %7 = vector.multi_reduction <add>, %6, %cst [1] : vector<2x8x128xf32> to vector<2x128xf32>
    %8 = arith.addf %5, %7 : vector<2x128xf32>
    %c0_8 = arith.constant 0 : index
    %c0_9 = arith.constant 0 : index
    %9 = vector.load %arg5[%c0_8, %c0_9] : memref<2x128xf32, #tpu.memory_space<vmem>>, vector<2x128xf32>
    tpu.vector_store %arg5[%c0_8, %c0_9], %8 {strides = array<i32>} : memref<2x128xf32, #tpu.memory_space<vmem>>, vector<2x128xf32>,
    %c0_10 = arith.constant 0 : index
    %c0_11 = arith.constant 0 : index
    %10 = vector.load %arg6[%c0_10, %c0_11] : memref<2x128xf32, #tpu.memory_space<vmem>>, vector<2x128xf32>
    %11 = arith.addf %3, %4 : vector<2x8x128xf32>
    %cst_12 = arith.constant dense<0.000000e+00> : vector<2x128xf32>
    %12 = vector.multi_reduction <add>, %11, %cst_12 [1] : vector<2x8x128xf32> to vector<2x128xf32>
    %13 = arith.addf %10, %12 : vector<2x128xf32>
    %c0_13 = arith.constant 0 : index
    %c0_14 = arith.constant 0 : index
    %14 = vector.load %arg6[%c0_13, %c0_14] : memref<2x128xf32, #tpu.memory_space<vmem>>, vector<2x128xf32>
    tpu.vector_store %arg6[%c0_13, %c0_14], %13 {strides = array<i32>} : memref<2x128xf32, #tpu.memory_space<vmem>>, vector<2x128xf32>,
    %c0_i32_15 = arith.constant 0 : i32
    %15 = arith.cmpi eq, %arg1, %c0_i32_15 : i32
    %16 = arith.extui %15 : i1 to i32
    %c0_i32_16 = arith.constant 0 : i32
    %17 = arith.cmpi ne, %16, %c0_i32_16 : i32
    scf.if %17 {
      %c0_17 = arith.constant 0 : index
      %c0_18 = arith.constant 0 : index
      %18 = vector.load %arg5[%c0_17, %c0_18] : memref<2x128xf32, #tpu.memory_space<vmem>>, vector<2x128xf32>
      %cst_19 = arith.constant dense<0.000000e+00> : vector<2xf32>
      %19 = vector.multi_reduction <add>, %18, %cst_19 [1] : vector<2x128xf32> to vector<2xf32>
      %20 = vector.shape_cast %19 : vector<2xf32> to vector<2x1xf32>
      %c0_20 = arith.constant 0 : index
      %c0_21 = arith.constant 0 : index
      %21 = vector.load %arg6[%c0_20, %c0_21] : memref<2x128xf32, #tpu.memory_space<vmem>>, vector<2x128xf32>
      %cst_22 = arith.constant dense<0.000000e+00> : vector<2xf32>
      %22 = vector.multi_reduction <add>, %21, %cst_22 [1] : vector<2x128xf32> to vector<2xf32>
      %23 = vector.shape_cast %22 : vector<2xf32> to vector<2x1xf32>
      %cst_23 = arith.constant 1.000000e+00 : f32
      %24 = vector.broadcast %cst_23 : f32 to vector<2x1xf32>
      %25 = arith.addf %20, %24 : vector<2x1xf32>
      %cst_24 = arith.constant 2.000000e+00 : f32
      %26 = vector.broadcast %cst_24 : f32 to vector<2x1xf32>
      %27 = arith.mulf %26, %25 : vector<2x1xf32>
      %cst_25 = arith.constant 1.000000e+00 : f32
      %28 = vector.broadcast %cst_25 : f32 to vector<2x1xf32>
      %29 = arith.addf %23, %28 : vector<2x1xf32>
      %30 = arith.divf %27, %29 : vector<2x1xf32>
      %31 = vector.shape_cast %30 : vector<2x1xf32> to vector<2x1xf32>
      %32 = vector.broadcast %31 : vector<2x1xf32> to vector<2x128xf32>
      %c0_26 = arith.constant 0 : index
      %c0_27 = arith.constant 0 : index
      %33 = vector.load %arg4[%c0_26, %c0_27] : memref<2x128xf32, #tpu.memory_space<vmem>>, vector<2x128xf32>
      tpu.vector_store %arg4[%c0_26, %c0_27], %32 {strides = array<i32>} : memref<2x128xf32, #tpu.memory_space<vmem>>, vector<2x128xf32>,
    } else {
    }
    return
  }
  func.func @transform_0(%arg0: i32, %arg1: i32) -> (i32, i32, i32) {
    %c0_i32 = arith.constant 0 : i32
    %c0_i32_0 = arith.constant 0 : i32
    return %arg0, %arg1, %c0_i32 : i32, i32, i32
  }
  func.func @transform_1(%arg0: i32, %arg1: i32) -> (i32, i32, i32) {
    %c0_i32 = arith.constant 0 : i32
    %c0_i32_0 = arith.constant 0 : i32
    return %arg0, %arg1, %c0_i32 : i32, i32, i32
  }
  func.func @transform_2(%arg0: i32, %arg1: i32) -> (i32, i32) {
    %c0_i32 = arith.constant 0 : i32
    %c0_i32_0 = arith.constant 0 : i32
    return %arg0, %c0_i32 : i32, i32
  }
}

</mosaic_0001>

<bundles_post_ra>
// kernel: tpu_custom_call.1
= control target key start
LH: loop header
LB: loop body
LE: loop exit
PB: predicated region body
PF: predicated region fallthrough
CT: control target
= control target key end

     0   :  { %7 = vsyncpa [#allocation5], 0  ;;  %s264_s0 = inlined_call_operand.hbm [shape: f32[2,8,128], index: 0, kind: input, shape index: {}]   ;;  %s265_s1 = inlined_call_operand.hbm [shape: f32[2,8,128], index: 1, kind: input, shape index: {}]   ;;  %s266_s2 = inlined_call_operand.hbm [shape: f32[2,128], index: 2, kind: output, shape index: {}]  }
   0x1   :  { %8 = vsyncpa [#allocation8], 0 }
   0x2   :  { %9 = vsyncpa [#allocation6], 0  ;;  %s207_s9 = smov [#allocation4]   ;;  %s135_s13 = scalar_lea.hbm %s264_s0, 256 }
   0x3   :  { %s15_s10 = sshll.u32 %s207_s9, 4  ;;  %p136_p0 = scmp.ne.s32.totalorder %s264_s0, %s135_s13  ;;  %s16_s10 = int_to_ptr.vmem [resolvable:$true] %s15_s10 }
   0x4   :  { %p139_p1 = scmp.lt.u32.totalorder %s135_s13, %s264_s0 }
   0x6   :  { %p141_p2 = pnand %p139_p1, %p136_p0 }
   0x8   :  { %144 = shalt.err (!%p141_p2)
}
   0x9   :  { %s145_s18 = scalar_lea.vmem %s16_s10, 256  ;;  %p150_p4 = scmp.lt.s32.totalorder %s16_s10, %s16_s10 }
   0xa   :  { %p146_p3 = scmp.ne.s32.totalorder %s16_s10, %s145_s18  ;;  %p151_p5 = scmp.lt.s32.totalorder %s145_s18, %s145_s18 }
   0xc   :  { %p152_p6 = por %p151_p5, %p150_p4 }
   0xe   :  { %p153_p7 = pnand %p152_p6, %p146_p3 }
  0x10   :  { %156 = shalt.err (!%p153_p7)
}
  0x11   :  { %s208_s19 = smov 128   ;;  %s209_s20 = smov 8  }
  0x12   :  { %21 = dma.hbm_to_vmem [thread:$0]  %s264_s0, 256, %s16_s10, [#allocation5], %s208_s19, %s208_s19, %s209_s20  }
  0x13   :  { %s210_s23 = smov [#allocation7]   ;;  %s157_s27 = scalar_lea.hbm %s265_s1, 256 }
  0x14   :  { %s27_s24 = sshll.u32 %s210_s23, 4  ;;  %p158_p8 = scmp.ne.s32.totalorder %s265_s1, %s157_s27  ;;  %s28_s24 = int_to_ptr.vmem [resolvable:$true] %s27_s24 }
  0x15   :  { %p161_p9 = scmp.lt.u32.totalorder %s157_s27, %s265_s1 }
  0x17   :  { %p163_p10 = pnand %p161_p9, %p158_p8 }
  0x19   :  { %166 = shalt.err (!%p163_p10)
}
  0x1a   :  { %s167_s4 = scalar_lea.vmem %s28_s24, 256  ;;  %p172_p12 = scmp.lt.s32.totalorder %s28_s24, %s28_s24 }
  0x1b   :  { %p168_p11 = scmp.ne.s32.totalorder %s28_s24, %s167_s4  ;;  %p173_p13 = scmp.lt.s32.totalorder %s167_s4, %s167_s4 }
  0x1d   :  { %p174_p0 = por %p173_p13, %p172_p12 }
  0x1f   :  { %p175_p1 = pnand %p174_p0, %p168_p11 }
  0x21   :  { %178 = shalt.err (!%p175_p1)
}
  0x22   :  { %33 = dma.hbm_to_vmem [thread:$0]  %s265_s1, 256, %s28_s24, [#allocation8], %s208_s19, %s208_s19, %s209_s20  }
  0x23   :  { %201 = dma.done.wait [#allocation5], 256  }
  0x24   :  { %202 = vsyncadd [#allocation5], 4294967040 }
  0x25   :  { %203 = dma.done.wait [#allocation8], 256  }
  0x26   :  { %204 = vsyncadd [#allocation8], 4294967040  ;;  %v211_v0 = vmov 0.0   ;;  %v46_v1 = vld [vmem:[#allocation4] sm:$0xff]  ;;  %v47_v2 = vld [vmem:[#allocation4 + $0x8] sm:$0xff]  ;;  %vm67_vm0 = vcmask 1041409  }
  0x27   :  { %45 = vst [vmem:[#allocation3] sm:$0x3] %v211_v0  ;;  %44 = vst [vmem:[#allocation2] sm:$0x3] %v211_v0  ;;  %v48_v3 = vld [vmem:[#allocation7] sm:$0xff]  ;;  %v49_v4 = vld [vmem:[#allocation7 + $0x8] sm:$0xff] }
  0x28   :  { %v73_v5 = vadd.f32 %v48_v3, %v46_v1  ;;  %v51_v6 = vmul.f32 %v48_v3, %v46_v1  ;;  %v74_v7 = vadd.f32 %v49_v4, %v47_v2  ;;  %v52_v8 = vmul.f32 %v49_v4, %v47_v2  ;;  %s212_s1 = smov [#allocation9]  }
  0x29   :  { %vm97_vm1 = vcmask 1041408   ;;  %s117_s6 = sshll.u32 %s212_s1, 4  ;;  %s118_s6 = int_to_ptr.vmem [resolvable:$true] %s117_s6 }
  0x2a   :  { %v75_v9 = vrot.slane %v73_v5, 4  ;;  %v53_v10 = vrot.slane %v51_v6, 4  ;;  %v81_v11 = vrot.slane %v74_v7, 4  ;;  %v59_v12 = vrot.slane %v52_v8, 4  ;;  %s179_s7 = scalar_lea.vmem %s118_s6, 32  ;;  %p184_p3 = scmp.lt.s32.totalorder %s118_s6, %s118_s6 }
  0x2b   :  { %p180_p2 = scmp.ne.s32.totalorder %s118_s6, %s179_s7  ;;  %p185_p4 = scmp.lt.s32.totalorder %s179_s7, %s179_s7 }
  0x2c   :  { %v76_v13 = vadd.f32 %v75_v9, %v73_v5  ;;  %v54_v14 = vadd.f32 %v53_v10, %v51_v6  ;;  %v82_v15 = vadd.f32 %v81_v11, %v74_v7  ;;  %v60_v16 = vadd.f32 %v59_v12, %v52_v8 }
  0x2d   :  { %p186_p5 = por %p185_p4, %p184_p3 }
  0x2e   :  { %v77_v17 = vrot.slane %v76_v13, 2  ;;  %v55_v18 = vrot.slane %v54_v14, 2  ;;  %v83_v19 = vrot.slane %v82_v15, 2  ;;  %v61_v20 = vrot.slane %v60_v16, 2  ;;  %v72_v31 = vld [vmem:[#allocation3] sm:$0x3] }
  0x2f   :  { %v50_v33 = vld [vmem:[#allocation2] sm:$0x3]  ;;  %p187_p6 = pnand %p186_p5, %p180_p2 }
  0x30   :  { %v78_v21 = vadd.f32 %v77_v17, %v76_v13  ;;  %v56_v22 = vadd.f32 %v55_v18, %v54_v14  ;;  %v84_v23 = vadd.f32 %v83_v19, %v82_v15  ;;  %v62_v24 = vadd.f32 %v61_v20, %v60_v16 }
  0x32   :  { %v79_v25 = vrot.slane %v78_v21, 1  ;;  %v57_v26 = vrot.slane %v56_v22, 1  ;;  %v85_v27 = vrot.slane %v84_v23, 1  ;;  %v63_v28 = vrot.slane %v62_v24, 1 }
  0x34   :  { %v80_v29 = vadd.f32 %v79_v25, %v78_v21  ;;  %v58_v30 = vadd.f32 %v57_v26, %v56_v22  ;;  %v86_v32 = vadd.f32 %v85_v27, %v84_v23  ;;  %v64_v34 = vadd.f32 %v63_v28, %v62_v24 }
  0x36   :  { %v89_v35 = vsel %vm67_vm0, %v86_v32, %v80_v29  ;;  %v68_v36 = vsel %vm67_vm0, %v64_v34, %v58_v30 }
  0x37   :  { %v91_v37 = vadd.f32 %v89_v35, %v72_v31  ;;  %v70_v38 = vadd.f32 %v68_v36, %v50_v33 }
  0x39   :  { %92 = vst [vmem:[#allocation3] sm:$0x3] %v91_v37  ;;  %71 = vst [vmem:[#allocation2] sm:$0x3] %v70_v38 }
  0x40   :  { %v101_v39 = vld [vmem:[#allocation3] sm:$0x3]  ;;  %v96_v40 = vld [vmem:[#allocation2] sm:$0x3] }
  0x41   :  { %v102_v41 = vsel %vm97_vm1, %v101_v39, 0.0  ;;  %v98_v42 = vsel %vm97_vm1, %v96_v40, 0.0 }
  0x42   :  { %103 = vadd.xlane.f32.xlu0 %v102_v41 }
  0x46   :  { %99 = vadd.xlane.f32.xlu0 %v98_v42 }
  0xcf   :  { %v104_v43 = vpop.xlane.xlu0 %103 }
  0xd0   :  { %v107_v44 = vadd.f32 1.0, %v104_v43 }
  0xd2   :  { %133 = vrcp.f32 %v107_v44 }
  0xd3   :  { %v100_v45 = vpop.xlane.xlu0 %99 }
  0xd4   :  { %v105_v46 = vadd.f32 1.0, %v100_v45 }
  0xd6   :  { %v106_v47 = vmul.f32 2.0, %v105_v46 }
  0xdc   :  { %v134_v48 = vpop.eup %133 }
  0xdd   :  { %v109_v49 = vmul.f32 %v134_v48, %v106_v47 }
  0xdf   :  { %110 = vst [vmem:[#allocation9] sm:$0x3] %v109_v49 }
  0xe0   :  { %190 = shalt.err (!%p187_p6)
}
  0xe1   :  { %s191_s10 = scalar_lea.hbm %s266_s2, 32 }
  0xe2   :  { %p192_p7 = scmp.ne.s32.totalorder %s266_s2, %s191_s10  ;;  %p195_p8 = scmp.lt.u32.totalorder %s191_s10, %s266_s2 }
  0xe4   :  { %p197_p9 = pnand %p195_p8, %p192_p7 }
  0xe6   :  { %200 = shalt.err (!%p197_p9)
}
  0xe7   :  { %120 = dma.vmem_to_hbm [thread:$0]  %s118_s6, 32, %s266_s2, [#allocation6]  }
  0xe8   :  { %205 = dma.done.wait [#allocation6], 32  }
  0xe9   :  { %206 = vsyncadd [#allocation6], 4294967264 }
  0xea   :  { %124 = vsyncpa [#allocation5], 1 }
  0xeb   :  { %125 = vsyncpa [#allocation8], 1 }
  0xec   :  { %126 = vsyncpa [#allocation6], 1 }

</bundles_post_ra>
